<compile_context>
chip_gen: v6e
topology: v6e:2x2x1
jax: 0.10.0
libtpu: 0.0.40
codegen_flags: <defaults>
</compile_context>

<pallas_src>
import math

import jax
import jax.numpy as jnp
from jax.experimental import pallas as pl
from jax.experimental.pallas import tpu as pltpu

_LANES = 128             # lane-dense last dim
_SUBLANES = 8            # (8, 128) alignment unit
_MAX_BLOCK_ROWS = 1024   # rows per grid step when tiling large inputs


def _add3_kernel(a_ref, b_ref, c_ref, o_ref):
    # x160 = x159 + x145 ; x175 = x174 + x160  (pure VPU, mem-bound)
    o_ref[...] = a_ref[...] + b_ref[...] + c_ref[...]


def _add_add_impl(x159, x145, x174):
    """operator.add(x174, operator.add(x159, x145)) via one Pallas kernel."""
    assert x159.shape == x145.shape == x174.shape
    assert x159.dtype == x145.dtype == x174.dtype
    orig_shape = x159.shape
    total = math.prod(orig_shape)

    # Pad the flattened length to a multiple of 8*128 so the 2D slab is
    # (8, 128)-aligned and every store is a full, unmasked lane write.
    chunk = _SUBLANES * _LANES
    padded_total = ((total + chunk - 1) // chunk) * chunk
    pad = padded_total - total
    rows = padded_total // _LANES

    def to_slab(x):
        flat = jnp.reshape(x, (-1,))
        if pad:
            flat = jnp.pad(flat, (0, pad))
        return jnp.reshape(flat, (rows, _LANES))

    a2 = to_slab(x159)
    b2 = to_slab(x145)
    c2 = to_slab(x174)

    # Single full-extent block for small inputs; row-tiled parallel grid for
    # large ones (keeps VMEM bounded on v7x's 64 MiB and shards across TCs).
    block_rows = rows if rows <= _MAX_BLOCK_ROWS else _MAX_BLOCK_ROWS
    grid = (pl.cdiv(rows, block_rows),)

    block_bytes = block_rows * _LANES * a2.dtype.itemsize
    # 4 arrays x 2 pipeline buffers x tile bytes, plus headroom; well under
    # the scoped default on every generation with this tiling.
    vmem_limit = min(128 << 20, 8 * block_bytes + (4 << 20))

    out2 = pl.pallas_call(
        _add3_kernel,
        out_shape=jax.ShapeDtypeStruct((rows, _LANES), a2.dtype),
        grid=grid,
        in_specs=[
            pl.BlockSpec((block_rows, _LANES), lambda i: (i, 0)),
            pl.BlockSpec((block_rows, _LANES), lambda i: (i, 0)),
            pl.BlockSpec((block_rows, _LANES), lambda i: (i, 0)),
        ],
        out_specs=pl.BlockSpec((block_rows, _LANES), lambda i: (i, 0)),
        # Reuse x174's (padded) buffer for the output: no fresh HBM allocation.
        input_output_aliases={2: 0},
        compiler_params=pltpu.CompilerParams(
            dimension_semantics=("parallel",),
            vmem_limit_bytes=vmem_limit,
        ),
    )(a2, b2, c2)

    out_flat = jnp.reshape(out2, (-1,))[:total]
    return jnp.reshape(out_flat, orig_shape)


# jit the wrapper so the pad/reshape plumbing fuses away and the aliased
# operand is an internal temp (making the output aliasing actually effective).
add_add = jax.jit(_add_add_impl)


if __name__ == "__main__":
    key = jax.random.PRNGKey(0)
    k1, k2, k3 = jax.random.split(key, 3)
    shape = (1, 88, 14, 14)  # shapes implied by the module's forward
    x145 = jax.random.normal(k1, shape, dtype=jnp.float32)
    x159 = jax.random.normal(k2, shape, dtype=jnp.float32)
    x174 = jax.random.normal(k3, shape, dtype=jnp.float32)

    # Reference computed via plain JAX / XLA fusion path.
    ref = (x159 + x145) + x174

    out = add_add(x159, x145, x174)
    jax.block_until_ready(out)

    assert out.shape == shape
    assert out.dtype == ref.dtype
    assert jnp.allclose(out, ref, atol=1e-6, rtol=1e-6), "mismatch vs reference"

    print("KERNEL_OK")
</pallas_src>

<mosaic_0001>
module attributes {stable_mosaic.version = 11 : i64} {
  func.func @_add3_kernel(%arg0: i32, %arg1: memref<136x128xf32, #tpu.memory_space<vmem>>, %arg2: memref<136x128xf32, #tpu.memory_space<vmem>>, %arg3: memref<136x128xf32, #tpu.memory_space<vmem>>, %arg4: memref<136x128xf32, #tpu.memory_space<vmem>>) attributes {dimension_semantics = [#tpu.dimension_semantics<parallel>], iteration_bounds = array<i64: 1>, scalar_prefetch = 0 : i64, scratch_operands = 0 : i64, tpu.core_type = #tpu.core_type<tc>, window_params = [{transform_indices = @transform_0, window_bounds = array<i64: 136, 128>}, {transform_indices = @transform_1, window_bounds = array<i64: 136, 128>}, {transform_indices = @transform_2, window_bounds = array<i64: 136, 128>}, {transform_indices = @transform_3, window_bounds = array<i64: 136, 128>}]} {
    %c0 = arith.constant 0 : index
    %c0_0 = arith.constant 0 : index
    %0 = vector.load %arg1[%c0, %c0_0] : memref<136x128xf32, #tpu.memory_space<vmem>>, vector<136x128xf32>
    %c0_1 = arith.constant 0 : index
    %c0_2 = arith.constant 0 : index
    %1 = vector.load %arg2[%c0_1, %c0_2] : memref<136x128xf32, #tpu.memory_space<vmem>>, vector<136x128xf32>
    %2 = arith.addf %0, %1 : vector<136x128xf32>
    %c0_3 = arith.constant 0 : index
    %c0_4 = arith.constant 0 : index
    %3 = vector.load %arg3[%c0_3, %c0_4] : memref<136x128xf32, #tpu.memory_space<vmem>>, vector<136x128xf32>
    %4 = arith.addf %2, %3 : vector<136x128xf32>
    %c0_5 = arith.constant 0 : index
    %c0_6 = arith.constant 0 : index
    %5 = vector.load %arg4[%c0_5, %c0_6] : memref<136x128xf32, #tpu.memory_space<vmem>>, vector<136x128xf32>
    tpu.vector_store %arg4[%c0_5, %c0_6], %4 {strides = array<i32>} : memref<136x128xf32, #tpu.memory_space<vmem>>, vector<136x128xf32>,
    return
  }
  func.func @transform_0(%arg0: i32) -> (i32, i32) {
    %c0_i32 = arith.constant 0 : i32
    %c0_i32_0 = arith.constant 0 : i32
    return %arg0, %c0_i32 : i32, i32
  }
  func.func @transform_1(%arg0: i32) -> (i32, i32) {
    %c0_i32 = arith.constant 0 : i32
    %c0_i32_0 = arith.constant 0 : i32
    return %arg0, %c0_i32 : i32, i32
  }
  func.func @transform_2(%arg0: i32) -> (i32, i32) {
    %c0_i32 = arith.constant 0 : i32
    %c0_i32_0 = arith.constant 0 : i32
    return %arg0, %c0_i32 : i32, i32
  }
  func.func @transform_3(%arg0: i32) -> (i32, i32) {
    %c0_i32 = arith.constant 0 : i32
    %c0_i32_0 = arith.constant 0 : i32
    return %arg0, %c0_i32 : i32, i32
  }
}

</mosaic_0001>

<bundles_post_ra>
// kernel: _add_add_impl.1
= control target key start
LH: loop header
LB: loop body
LE: loop exit
PB: predicated region body
PF: predicated region fallthrough
CT: control target
= control target key end

     0   :  { %s344_s0 = inlined_call_operand.vmem [shape: f32[136,128], index: 0, kind: input, shape index: {}]   ;;  %s345_s1 = inlined_call_operand.vmem [shape: f32[136,128], index: 1, kind: input, shape index: {}]   ;;  %s346_s2 = inlined_call_operand.vmem [shape: f32[136,128], index: 2, kind: input, shape index: {}, may-alias: {2,3}]   ;;  %s347_s3 = inlined_call_operand.vmem [shape: f32[136,128], index: 3, kind: output, shape index: {}, may-alias: {2,3}]  }
   0x1   :  { %v14_v0 = vld [vmem:[%s344_s0] sm:$0xff]  ;;  %v15_v4 = vld [vmem:[%s344_s0 + $0x8] sm:$0xff]  ;;  %v16_v8 = vld [vmem:[%s344_s0 + $0x10] sm:$0xff] }
   0x2   :  { %v31_v1 = vld [vmem:[%s345_s1] sm:$0xff]  ;;  %v32_v5 = vld [vmem:[%s345_s1 + $0x8] sm:$0xff]  ;;  %v33_v9 = vld [vmem:[%s345_s1 + $0x10] sm:$0xff] }
   0x3   :  { %v65_v2 = vld [vmem:[%s346_s2] sm:$0xff]  ;;  %v48_v3 = vadd.f32 %v31_v1, %v14_v0  ;;  %v66_v6 = vld [vmem:[%s346_s2 + $0x8] sm:$0xff]  ;;  %v49_v7 = vadd.f32 %v32_v5, %v15_v4  ;;  %v67_v10 = vld [vmem:[%s346_s2 + $0x10] sm:$0xff]  ;;  %v50_v12 = vadd.f32 %v33_v9, %v16_v8 }
   0x4   :  { %v17_v13 = vld [vmem:[%s344_s0 + $0x18] sm:$0xff]  ;;  %v18_v18 = vld [vmem:[%s344_s0 + $0x20] sm:$0xff]  ;;  %v19_v23 = vld [vmem:[%s344_s0 + $0x28] sm:$0xff] }
   0x5   :  { %v82_v11 = vadd.f32 %v65_v2, %v48_v3  ;;  %v34_v14 = vld [vmem:[%s345_s1 + $0x18] sm:$0xff]  ;;  %v83_v16 = vadd.f32 %v66_v6, %v49_v7  ;;  %v35_v19 = vld [vmem:[%s345_s1 + $0x20] sm:$0xff]  ;;  %v84_v21 = vadd.f32 %v67_v10, %v50_v12  ;;  %v36_v24 = vld [vmem:[%s345_s1 + $0x28] sm:$0xff] }
   0x6   :  { %v68_v15 = vld [vmem:[%s346_s2 + $0x18] sm:$0xff]  ;;  %v51_v17 = vadd.f32 %v34_v14, %v17_v13  ;;  %v69_v20 = vld [vmem:[%s346_s2 + $0x20] sm:$0xff]  ;;  %v52_v22 = vadd.f32 %v35_v19, %v18_v18  ;;  %v53_v27 = vadd.f32 %v36_v24, %v19_v23  ;;  %v20_v28 = vld [vmem:[%s344_s0 + $0x30] sm:$0xff] }
   0x7   :  { %99 = vst [vmem:[%s347_s3] sm:$0xff] %v82_v11  ;;  %v37_v29 = vld [vmem:[%s345_s1 + $0x30] sm:$0xff]  ;;  %v21_v33 = vld [vmem:[%s344_s0 + $0x38] sm:$0xff]  ;;  %v22_v38 = vld [vmem:[%s344_s0 + $0x40] sm:$0xff] }
   0x8   :  { %v85_v26 = vadd.f32 %v68_v15, %v51_v17  ;;  %v86_v31 = vadd.f32 %v69_v20, %v52_v22  ;;  %v54_v32 = vadd.f32 %v37_v29, %v20_v28  ;;  %v38_v34 = vld [vmem:[%s345_s1 + $0x38] sm:$0xff]  ;;  %v39_v39 = vld [vmem:[%s345_s1 + $0x40] sm:$0xff]  ;;  %v23_v43 = vld [vmem:[%s344_s0 + $0x48] sm:$0xff] }
   0x9   :  { %v55_v37 = vadd.f32 %v38_v34, %v21_v33  ;;  %v56_v42 = vadd.f32 %v39_v39, %v22_v38  ;;  %v40_v44 = vld [vmem:[%s345_s1 + $0x48] sm:$0xff]  ;;  %v24_v48 = vld [vmem:[%s344_s0 + $0x50] sm:$0xff]  ;;  %v25_v53 = vld [vmem:[%s344_s0 + $0x58] sm:$0xff] }
   0xa   :  { %v57_v47 = vadd.f32 %v40_v44, %v23_v43  ;;  %v41_v49 = vld [vmem:[%s345_s1 + $0x50] sm:$0xff]  ;;  %v42_v54 = vld [vmem:[%s345_s1 + $0x58] sm:$0xff]  ;;  %v26_v58 = vld [vmem:[%s344_s0 + $0x60] sm:$0xff] }
   0xb   :  { %v58_v52 = vadd.f32 %v41_v49, %v24_v48  ;;  %v59_v57 = vadd.f32 %v42_v54, %v25_v53  ;;  %v43_v59 = vld [vmem:[%s345_s1 + $0x60] sm:$0xff]  ;;  %v27_v63 = vld [vmem:[%s344_s0 + $0x68] sm:$0xff]  ;;  %v28_v4 = vld [vmem:[%s344_s0 + $0x70] sm:$0xff] }
   0xc   :  { %v60_v62 = vadd.f32 %v43_v59, %v26_v58  ;;  %v44_v0 = vld [vmem:[%s345_s1 + $0x68] sm:$0xff]  ;;  %v45_v5 = vld [vmem:[%s345_s1 + $0x70] sm:$0xff]  ;;  %v29_v9 = vld [vmem:[%s344_s0 + $0x78] sm:$0xff] }
   0xd   :  { %v61_v3 = vadd.f32 %v44_v0, %v27_v63  ;;  %v62_v8 = vadd.f32 %v45_v5, %v28_v4  ;;  %v46_v10 = vld [vmem:[%s345_s1 + $0x78] sm:$0xff]  ;;  %v30_v14 = vld [vmem:[%s344_s0 + $0x80] sm:$0xff] }
   0xe   :  { %v70_v25 = vld [vmem:[%s346_s2 + $0x28] sm:$0xff]  ;;  %v63_v13 = vadd.f32 %v46_v10, %v29_v9  ;;  %v47_v15 = vld [vmem:[%s345_s1 + $0x80] sm:$0xff] }
   0xf   :  { %100 = vst [vmem:[%s347_s3 + $0x8] sm:$0xff] %v83_v16  ;;  %v87_v36 = vadd.f32 %v70_v25, %v53_v27  ;;  %v64_v18 = vadd.f32 %v47_v15, %v30_v14 }
  0x16   :  { %v71_v30 = vld [vmem:[%s346_s2 + $0x30] sm:$0xff] }
  0x17   :  { %101 = vst [vmem:[%s347_s3 + $0x10] sm:$0xff] %v84_v21  ;;  %v88_v41 = vadd.f32 %v71_v30, %v54_v32 }
  0x1e   :  { %v72_v35 = vld [vmem:[%s346_s2 + $0x38] sm:$0xff] }
  0x1f   :  { %102 = vst [vmem:[%s347_s3 + $0x18] sm:$0xff] %v85_v26  ;;  %v89_v46 = vadd.f32 %v72_v35, %v55_v37 }
  0x26   :  { %v73_v40 = vld [vmem:[%s346_s2 + $0x40] sm:$0xff] }
  0x27   :  { %103 = vst [vmem:[%s347_s3 + $0x20] sm:$0xff] %v86_v31  ;;  %v90_v51 = vadd.f32 %v73_v40, %v56_v42 }
  0x2e   :  { %v74_v45 = vld [vmem:[%s346_s2 + $0x48] sm:$0xff] }
  0x2f   :  { %104 = vst [vmem:[%s347_s3 + $0x28] sm:$0xff] %v87_v36  ;;  %v91_v56 = vadd.f32 %v74_v45, %v57_v47 }
  0x36   :  { %v75_v50 = vld [vmem:[%s346_s2 + $0x50] sm:$0xff] }
  0x37   :  { %105 = vst [vmem:[%s347_s3 + $0x30] sm:$0xff] %v88_v41  ;;  %v92_v61 = vadd.f32 %v75_v50, %v58_v52 }
  0x3e   :  { %v76_v55 = vld [vmem:[%s346_s2 + $0x58] sm:$0xff] }
  0x3f   :  { %106 = vst [vmem:[%s347_s3 + $0x38] sm:$0xff] %v89_v46  ;;  %v93_v2 = vadd.f32 %v76_v55, %v59_v57 }
  0x46   :  { %v77_v60 = vld [vmem:[%s346_s2 + $0x60] sm:$0xff] }
  0x47   :  { %107 = vst [vmem:[%s347_s3 + $0x40] sm:$0xff] %v90_v51  ;;  %v94_v7 = vadd.f32 %v77_v60, %v60_v62 }
  0x4e   :  { %v78_v1 = vld [vmem:[%s346_s2 + $0x68] sm:$0xff] }
  0x4f   :  { %108 = vst [vmem:[%s347_s3 + $0x48] sm:$0xff] %v91_v56  ;;  %v95_v12 = vadd.f32 %v78_v1, %v61_v3 }
  0x56   :  { %v79_v6 = vld [vmem:[%s346_s2 + $0x70] sm:$0xff] }
  0x57   :  { %109 = vst [vmem:[%s347_s3 + $0x50] sm:$0xff] %v92_v61  ;;  %v96_v17 = vadd.f32 %v79_v6, %v62_v8 }
  0x5e   :  { %v80_v11 = vld [vmem:[%s346_s2 + $0x78] sm:$0xff] }
  0x5f   :  { %110 = vst [vmem:[%s347_s3 + $0x58] sm:$0xff] %v93_v2  ;;  %v97_v19 = vadd.f32 %v80_v11, %v63_v13 }
  0x66   :  { %v81_v16 = vld [vmem:[%s346_s2 + $0x80] sm:$0xff] }
  0x67   :  { %111 = vst [vmem:[%s347_s3 + $0x60] sm:$0xff] %v94_v7  ;;  %112 = vst [vmem:[%s347_s3 + $0x68] sm:$0xff] %v95_v12  ;;  %v98_v20 = vadd.f32 %v81_v16, %v64_v18 }
  0x68   :  { %113 = vst [vmem:[%s347_s3 + $0x70] sm:$0xff] %v96_v17  ;;  %114 = vst [vmem:[%s347_s3 + $0x78] sm:$0xff] %v97_v19 }
  0x69   :  { %115 = vst [vmem:[%s347_s3 + $0x80] sm:$0xff] %v98_v20 }

</bundles_post_ra>
